<compile_context>
chip_gen: v6e
topology: v6e:2x2x1
jax: 0.10.0
libtpu: 0.0.40
codegen_flags: <defaults>
</compile_context>

<pallas_src>
import jax
import jax.numpy as jnp
from jax.experimental import pallas as pl
from jax.experimental.pallas import tpu as pltpu

LANES = 128
_MIB = 1024 * 1024


def _scale_kernel(scale_ref, x_ref, o_ref):
    # scale_ref: (1,) f32 in SMEM.  x_ref / o_ref: VMEM tiles (2-D or 1-D).
    # Do the multiply in the input dtype: avoids promoting every vreg to f32
    # and converting back for bf16/fp8 inputs; identical result for f32.
    s = scale_ref[0].astype(x_ref.dtype)
    o_ref[...] = x_ref[...] * s


def _round_up(x, m):
    return ((x + m - 1) // m) * m


def _cdiv(a, b):
    return -(-a // b)


def _sublane_pack(dtype):
    # Native sublane packing of the dtype: f32 -> 8, bf16/f16 -> 16, int8/fp8 -> 32.
    itemsize = jnp.dtype(dtype).itemsize
    return 8 * max(1, 4 // itemsize)


def _target_tile_bytes():
    # Bigger tiles amortize the fixed ~0.35 us per-grid-step overhead better on
    # high-bandwidth chips (v6e ~1.4 TB/s, v7x ~3.2 TB/s).  Older / lower-BW
    # chips are already past the roofline knee at 2 MiB tiles.
    try:
        kind = jax.devices()[0].device_kind.lower()
    except Exception:  # defensive: no devices visible at trace time
        return 2 * _MIB
    for old in ("v2", "v3", "v4", "v5 lite", "v5lite", "v5e"):
        if old in kind:
            return 2 * _MIB
    return 4 * _MIB  # v6e / v7x / newer


def _pick_tile_rows(rows, dtype, tile_bytes):
    """Rows per tile: dtype-pack aligned, <= tile_bytes, and >=4 grid steps when possible."""
    pack = _sublane_pack(dtype)
    itemsize = jnp.dtype(dtype).itemsize
    tr = max(pack, (tile_bytes // (LANES * itemsize)) // pack * pack)
    # Never ask for a tile (much) larger than the whole problem.
    tr = min(tr, _round_up(rows, pack))
    # Shrink (down to a ~512-row floor, always a multiple of the pack) until
    # there are >=4 grid steps, so v7x's two TensorCores each get >=2 pipelined
    # "parallel" steps and double-buffering has something to overlap with.
    floor = max(pack, 512)
    while tr > floor and _cdiv(rows, tr) < 4:
        tr = max(floor, ((tr // 2) // pack) * pack)
    return tr


def pallas_scale(x, scale, *, donate=False):
    """Elementwise x * scale (scale is a learnable scalar) via a Pallas TPU kernel."""
    orig_shape = x.shape
    if x.size == 0:
        return x
    # Match PyTorch promotion: integer/bool input * float 0-dim parameter -> float.
    if not jnp.issubdtype(x.dtype, jnp.floating):
        x = x.astype(jnp.float32)
    dtype = x.dtype
    n_elem = int(x.size)
    itemsize = jnp.dtype(dtype).itemsize

    scale_arr = jnp.asarray(scale, dtype=jnp.float32).reshape((1,))
    tile_bytes = _target_tile_bytes()

    xf = x.reshape(-1)
    if n_elem % LANES == 0:
        # Common case: lane-dense (rows, 128) slab.  Ragged row counts are
        # handled by Pallas partial blocks (grid = cdiv), so no jnp.pad and no
        # trailing slice -- both would be full extra HBM passes.
        rows = n_elem // LANES
        tr = _pick_tile_rows(rows, dtype, tile_bytes)
        grid = (_cdiv(rows, tr),)
        data = xf.reshape(rows, LANES)
        tile_spec = pl.BlockSpec((tr, LANES), lambda i: (i, 0))
        out_shape = jax.ShapeDtypeStruct((rows, LANES), dtype)
        tile_elems = tr * LANES
    else:
        # Ragged element count: block the flat 1-D array directly.  The partial
        # last block is padded on read / clipped on write by Pallas, so no
        # padding copy is ever materialized.
        rows = _cdiv(n_elem, LANES)
        tr = _pick_tile_rows(rows, dtype, tile_bytes)
        blk = tr * LANES
        grid = (_cdiv(n_elem, blk),)
        data = xf
        tile_spec = pl.BlockSpec((blk,), lambda i: (i,))
        out_shape = jax.ShapeDtypeStruct((n_elem,), dtype)
        tile_elems = blk

    # Pipelined VMEM footprint: (1 in + 1 out) x 2 buffers x tile (+ margin).
    footprint = 4 * tile_elems * itemsize
    vmem_limit = max(16 * _MIB, footprint + 2 * _MIB)

    out = pl.pallas_call(
        _scale_kernel,
        out_shape=out_shape,
        grid_spec=pltpu.PrefetchScalarGridSpec(
            num_scalar_prefetch=0,
            grid=grid,
            in_specs=[
                pl.BlockSpec(memory_space=pltpu.MemorySpace.SMEM),  # scalar scale
                tile_spec,
            ],
            out_specs=tile_spec,
        ),
        compiler_params=pltpu.CompilerParams(
            dimension_semantics=("parallel",),
            vmem_limit_bytes=vmem_limit,
        ),
        # Reuse x's HBM buffer for the output when the caller donates x.
        input_output_aliases={1: 0} if donate else {},
    )(scale_arr, data)

    return out.reshape(orig_shape)


class Scale:
    """JAX/Pallas equivalent of the PyTorch Scale module: y = x * scale."""

    def __init__(self, scale: float = 1.0):
        self.scale = jnp.asarray(scale, dtype=jnp.float32)

    def __call__(self, x):
        return pallas_scale(x, self.scale)


if __name__ == "__main__":
    key = jax.random.PRNGKey(0)
    shape = (2, 4, 16, 16)  # NCHW, matching the PyTorch convention
    x = jax.random.normal(key, shape, dtype=jnp.float32)

    module = Scale(scale=1.5)
    out = module(x)
    jax.block_until_ready(out)

    ref = x * jnp.float32(1.5)
    assert out.shape == shape
    assert out.dtype == x.dtype
    assert jnp.allclose(out, ref, atol=1e-6, rtol=1e-6), "mismatch vs reference"
    print("KERNEL_OK")
</pallas_src>

<mosaic_0001>
module attributes {stable_mosaic.version = 11 : i64} {
  func.func @_scale_kernel(%arg0: i32, %arg1: memref<1xf32, #tpu.memory_space<smem>>, %arg2: memref<16x128xf32, #tpu.memory_space<vmem>>, %arg3: memref<16x128xf32, #tpu.memory_space<vmem>>) attributes {dimension_semantics = [#tpu.dimension_semantics<parallel>], iteration_bounds = array<i64: 1>, scalar_prefetch = 0 : i64, scratch_operands = 0 : i64, tpu.core_type = #tpu.core_type<tc>, window_params = [{transform_indices = @transform_0, window_bounds = array<i64: 1>}, {transform_indices = @transform_1, window_bounds = array<i64: 16, 128>}, {transform_indices = @transform_2, window_bounds = array<i64: 16, 128>}]} {
    %c0 = arith.constant 0 : index
    %0 = memref.load %arg1[%c0] : memref<1xf32, #tpu.memory_space<smem>>
    %c0_0 = arith.constant 0 : index
    %c0_1 = arith.constant 0 : index
    %1 = vector.load %arg2[%c0_0, %c0_1] : memref<16x128xf32, #tpu.memory_space<vmem>>, vector<16x128xf32>
    %2 = vector.broadcast %0 : f32 to vector<16x128xf32>
    %3 = arith.mulf %1, %2 : vector<16x128xf32>
    %c0_2 = arith.constant 0 : index
    %c0_3 = arith.constant 0 : index
    %4 = vector.load %arg3[%c0_2, %c0_3] : memref<16x128xf32, #tpu.memory_space<vmem>>, vector<16x128xf32>
    tpu.vector_store %arg3[%c0_2, %c0_3], %3 {strides = array<i32>} : memref<16x128xf32, #tpu.memory_space<vmem>>, vector<16x128xf32>,
    return
  }
  func.func @transform_0(%arg0: i32) -> i32 {
    %c0_i32 = arith.constant 0 : i32
    %c0_i32_0 = arith.constant 0 : i32
    return %c0_i32 : i32
  }
  func.func @transform_1(%arg0: i32) -> (i32, i32) {
    %c0_i32 = arith.constant 0 : i32
    %c0_i32_0 = arith.constant 0 : i32
    return %arg0, %c0_i32 : i32, i32
  }
  func.func @transform_2(%arg0: i32) -> (i32, i32) {
    %c0_i32 = arith.constant 0 : i32
    %c0_i32_0 = arith.constant 0 : i32
    return %arg0, %c0_i32 : i32, i32
  }
}

</mosaic_0001>

<bundles_post_ra>
// kernel: tpu_custom_call.1
= control target key start
LH: loop header
LB: loop body
LE: loop exit
PB: predicated region body
PF: predicated region fallthrough
CT: control target
= control target key end

     0   :  { %8 = vsyncpa [#allocation4], 0  ;;  %s128_s0 = inlined_call_operand.<no memory space> [shape: f32[1], index: 0, kind: input, shape index: {}]   ;;  %s129_s1 = inlined_call_operand.hbm [shape: f32[16,128], index: 1, kind: input, shape index: {}]   ;;  %s130_s2 = inlined_call_operand.hbm [shape: f32[16,128], index: 2, kind: output, shape index: {}]  }
   0x1   :  { %9 = vsyncpa [#allocation5], 0  ;;  %s100_s9 = smov [#allocation3]  }
   0x2   :  { %s17_s10 = sshll.u32 %s100_s9, 4  ;;  %s18_s10 = int_to_ptr.vmem [resolvable:$true] %s17_s10 }
   0x3   :  { %s64_s11 = scalar_lea.vmem %s18_s10, 256  ;;  %p69_p1 = scmp.lt.s32.totalorder %s18_s10, %s18_s10 }
   0x4   :  { %p65_p0 = scmp.ne.s32.totalorder %s18_s10, %s64_s11  ;;  %p70_p2 = scmp.lt.s32.totalorder %s64_s11, %s64_s11 }
   0x6   :  { %p71_p3 = por %p70_p2, %p69_p1 }
   0x8   :  { %p72_p4 = pnand %p71_p3, %p65_p0 }
   0xa   :  { %75 = shalt.err (!%p72_p4)
}
   0xb   :  { %s101_s12 = smov 128   ;;  %s102_s13 = smov 8  }
   0xc   :  { %23 = dma.hbm_to_vmem [thread:$0]  %s129_s1, 256, %s18_s10, [#allocation4], %s101_s12, %s101_s12, %s102_s13  }
   0xd   :  { %96 = dma.done.wait [#allocation4], 256  }
   0xe   :  { %97 = vsyncadd [#allocation4], 4294967040  ;;  %v30_v0 = vstv %s128_s0  ;;  %s103_s18 = smov [#allocation6]   ;;  %v28_v1 = vld [vmem:[#allocation3] sm:$0xff]  ;;  %v29_v2 = vld [vmem:[#allocation3 + $0x8] sm:$0xff] }
   0xf   :  { %s40_s19 = sshll.u32 %s103_s18, 4  ;;  %v31_v3 = vmul.f32 %v30_v0, %v28_v1  ;;  %v32_v4 = vmul.f32 %v30_v0, %v29_v2  ;;  %s41_s19 = int_to_ptr.vmem [resolvable:$true] %s40_s19 }
  0x10   :  { %s76_s20 = scalar_lea.vmem %s41_s19, 256  ;;  %p81_p6 = scmp.lt.s32.totalorder %s41_s19, %s41_s19 }
  0x11   :  { %33 = vst [vmem:[#allocation6] sm:$0xff] %v31_v3  ;;  %34 = vst [vmem:[#allocation6 + $0x8] sm:$0xff] %v32_v4  ;;  %p77_p5 = scmp.ne.s32.totalorder %s41_s19, %s76_s20  ;;  %p82_p7 = scmp.lt.s32.totalorder %s76_s20, %s76_s20 }
  0x13   :  { %p83_p8 = por %p82_p7, %p81_p6 }
  0x15   :  { %p84_p9 = pnand %p83_p8, %p77_p5 }
  0x17   :  { %87 = shalt.err (!%p84_p9)
}
  0x18   :  { %46 = dma.vmem_to_hbm [thread:$0]  %s41_s19, 256, %s130_s2, [#allocation5], %s101_s12, %s101_s12, %s102_s13  }
  0x19   :  { %98 = dma.done.wait [#allocation5], 256  }
  0x1a   :  { %99 = vsyncadd [#allocation5], 4294967040 }
  0x1b   :  { %50 = vsyncpa [#allocation4], 1 }
  0x1c   :  { %51 = vsyncpa [#allocation5], 1 }

</bundles_post_ra>
